<compile_context>
chip_gen: v5e
topology: v5e:2x2
jax: 0.10.0
libtpu: 0.0.40
codegen_flags: <defaults>
</compile_context>

<pallas_src>
import math

import jax
import jax.numpy as jnp
from jax.experimental import pallas as pl
from jax.experimental.pallas import tpu as pltpu


def _round_up(v, m):
    return -(-v // m) * m


def _sinusoid_kernel(a_ref, b_ref, s_ref, c_ref, out_ref):
    """a_ref/b_ref: [1, W] per-lane freq/phase.  s_ref/c_ref: [row_tile, W] resident
    sin/cos tables of the in-tile angle l*A.  out_ref: [row_tile, W]."""
    row_tile = out_ref.shape[0]
    i = pl.program_id(0)
    a = a_ref[...]                                                  # [1, W]
    # Fold this tile's global row offset into the phase: a single [1, W] FMA
    # (no full-tile "+ offset" VPU add).
    base = b_ref[...] + (i * row_tile).astype(jnp.float32) * a      # [1, W]
    # Only transcendentals in the whole tile: sin/cos of one [1, W] row.
    sin_b = jnp.sin(base)
    cos_b = jnp.cos(base)
    # Angle addition: sin(base + l*A) = sin(base)*cos(l*A) + cos(base)*sin(l*A).
    # 2 muls + 1 add per element; lane-dense full-width store.
    out_ref[...] = (sin_b * c_ref[...] + cos_b * s_ref[...]).astype(out_ref.dtype)


def sinusoidal_embeddings(dim, x=None, length=0, timestep=-1, *,
                          target_block_bytes=2 * 1024 * 1024,
                          out_dtype=jnp.float32):
    """JAX/Pallas port of SinusoidalEmbeddings.forward -> [n, 2*ceil(dim/2)] table."""
    if x is not None:
        assert length == 0 and timestep == -1
        n = x.shape[0]
    elif length > 0:
        assert timestep == -1
        n = length
    elif timestep >= 0:
        n = timestep + 1
    else:
        raise ValueError("need x, length, or timestep")

    half = (dim + 1) // 2              # len(arange(0, dim, 2))
    emb_dim = 2 * half

    # Deterministic "buffer" from the module __init__.
    inv_freq = 1.0 / (10000.0 ** (jnp.arange(0, dim, 2, dtype=jnp.float32) / dim))
    freq_full = jnp.concatenate([inv_freq, inv_freq])                           # [emb_dim]
    phase_full = jnp.concatenate([jnp.zeros((half,), jnp.float32),
                                  jnp.full((half,), math.pi / 2, jnp.float32)])  # [emb_dim]

    # ---- lane-dense width W (always a multiple of 128 -> never masked stores) --------
    lcm = (emb_dim * 128) // math.gcd(emb_dim, 128)
    if lcm <= 8192:
        # Pack `rows_per` consecutive time steps row-major into one slab row of width W.
        W = lcm
        rows_per = W // emb_dim
        pad_cols = 0
        n_rows = -(-n // rows_per)
        freq_t = jnp.tile(freq_full, rows_per)
        phase_t = jnp.tile(phase_full, rows_per)
        toff = jnp.repeat(jnp.arange(rows_per, dtype=jnp.float32), emb_dim)
        a_tab = freq_t * float(rows_per)          # angle = r*A[j] + B[j]
        b_tab = toff * freq_t + phase_t
    else:
        # Pathological widths: pad the last dim up to a multiple of 128 instead.
        # Pad lanes get freq=0 / phase=0 (written as 0) and are sliced off afterwards.
        W = _round_up(emb_dim, 128)
        rows_per = 1
        pad_cols = W - emb_dim
        n_rows = n
        a_tab = jnp.concatenate([freq_full, jnp.zeros((pad_cols,), jnp.float32)])
        b_tab = jnp.concatenate([phase_full, jnp.zeros((pad_cols,), jnp.float32)])
    a_tab = a_tab.reshape(1, W).astype(jnp.float32)
    b_tab = b_tab.reshape(1, W).astype(jnp.float32)

    # ---- row tile sized by bytes (~2 MiB output block), sublane-aligned --------------
    row_align = max(8, 32 // jnp.dtype(out_dtype).itemsize)   # f32->8, bf16->16
    row_tile = max(row_align,
                   (target_block_bytes // (W * 4)) // row_align * row_align)
    row_tile = min(row_tile, _round_up(n_rows, row_align))
    grid_rows = pl.cdiv(n_rows, row_tile)
    # v7x megacore: ensure the "parallel" grid axis has >=2 tiles so both TCs get work.
    if grid_rows == 1 and n_rows >= 2 * row_align:
        row_tile = _round_up(-(-n_rows // 2), row_align)
        grid_rows = pl.cdiv(n_rows, row_tile)
    alloc_rows = grid_rows * row_tile              # whole tiles -> no ragged writeback

    # One-time setup (plain JAX, size independent of n): in-tile sin/cos tables.
    l = jnp.arange(row_tile, dtype=jnp.float32).reshape(row_tile, 1)
    in_tile_angle = l * a_tab                      # [row_tile, W]
    s_full = jnp.sin(in_tile_angle)
    c_full = jnp.cos(in_tile_angle)

    flat = pl.pallas_call(
        _sinusoid_kernel,
        out_shape=jax.ShapeDtypeStruct((alloc_rows, W), out_dtype),
        grid_spec=pltpu.PrefetchScalarGridSpec(
            num_scalar_prefetch=0,
            grid=(grid_rows,),
            in_specs=[pl.BlockSpec((1, W), lambda i: (0, 0)),          # A (freq)
                      pl.BlockSpec((1, W), lambda i: (0, 0)),          # B (phase)
                      pl.BlockSpec((row_tile, W), lambda i: (0, 0)),   # sin(l*A), resident
                      pl.BlockSpec((row_tile, W), lambda i: (0, 0))],  # cos(l*A), resident
            out_specs=pl.BlockSpec((row_tile, W), lambda i: (i, 0)),
        ),
        compiler_params=pltpu.CompilerParams(
            dimension_semantics=("parallel",),
            vmem_limit_bytes=32 * 1024 * 1024),
    )(a_tab, b_tab, s_full, c_full)

    if rows_per > 1:
        # Row-major reshape back to [*, emb_dim] and trim padding rows.
        emb = flat.reshape(alloc_rows * rows_per, emb_dim)[:n]
    elif pad_cols:
        emb = flat[:n, :emb_dim]
    else:
        emb = flat[:n]
    return emb


def _reference(dim, n):
    inv_freq = 1.0 / (10000.0 ** (jnp.arange(0, dim, 2, dtype=jnp.float32) / dim))
    t = jnp.arange(n, dtype=jnp.float32)
    sinusoid = jnp.einsum("i,j->ij", t, inv_freq)
    return jnp.concatenate([jnp.sin(sinusoid), jnp.cos(sinusoid)], axis=-1)


if __name__ == "__main__":
    # x: [time x bsz x hidden] as in the PyTorch docstring.
    time, bsz, hidden = 8, 2, 32
    key = jax.random.PRNGKey(0)
    x = jax.random.normal(key, (time, bsz, hidden), dtype=jnp.float32)

    dim = hidden

    # Path 1: n from x (dim=32 -> lane-dense packed [*, 128] layout internally).
    emb = jax.block_until_ready(sinusoidal_embeddings(dim, x=x))
    ref = _reference(dim, time)
    assert emb.shape == (time, dim) and emb.dtype == jnp.float32
    assert jnp.allclose(emb, ref, atol=1e-5, rtol=1e-5)

    # Path 2: n from `length`, not a multiple of the internal packing factor.
    n2 = 11
    emb2 = jax.block_until_ready(sinusoidal_embeddings(dim, length=n2))
    ref2 = _reference(dim, n2)
    assert emb2.shape == (n2, dim)
    assert jnp.allclose(emb2, ref2, atol=1e-5, rtol=1e-5)

    # Path 3: n from `timestep`, padded-width fallback (emb_dim=250 -> W=256, 6 pad lanes).
    emb3 = jax.block_until_ready(sinusoidal_embeddings(250, timestep=19))
    ref3 = _reference(250, 20)
    assert emb3.shape == (20, 250)
    assert jnp.allclose(emb3, ref3, atol=1e-5, rtol=1e-5)

    print("KERNEL_OK")
</pallas_src>

<mosaic_0001>
module attributes {stable_mosaic.version = 11 : i64} {
  func.func @_sinusoid_kernel(%arg0: i32, %arg1: memref<1x128xf32, #tpu.memory_space<vmem>>, %arg2: memref<1x128xf32, #tpu.memory_space<vmem>>, %arg3: memref<8x128xf32, #tpu.memory_space<vmem>>, %arg4: memref<8x128xf32, #tpu.memory_space<vmem>>, %arg5: memref<8x128xf32, #tpu.memory_space<vmem>>) attributes {dimension_semantics = [#tpu.dimension_semantics<parallel>], iteration_bounds = array<i64: 1>, scalar_prefetch = 0 : i64, scratch_operands = 0 : i64, tpu.core_type = #tpu.core_type<tc>, window_params = [{pipeline_mode = #tpu.pipeline_mode<synchronous>, transform_indices = @transform_0, window_bounds = array<i64: 1, 128>}, {pipeline_mode = #tpu.pipeline_mode<synchronous>, transform_indices = @transform_1, window_bounds = array<i64: 1, 128>}, {pipeline_mode = #tpu.pipeline_mode<synchronous>, transform_indices = @transform_2, window_bounds = array<i64: 8, 128>}, {pipeline_mode = #tpu.pipeline_mode<synchronous>, transform_indices = @transform_3, window_bounds = array<i64: 8, 128>}, {transform_indices = @transform_4, window_bounds = array<i64: 8, 128>}]} {
    %c0 = arith.constant 0 : index
    %c0_0 = arith.constant 0 : index
    %0 = vector.load %arg1[%c0, %c0_0] : memref<1x128xf32, #tpu.memory_space<vmem>>, vector<1x128xf32>
    %c0_1 = arith.constant 0 : index
    %c0_2 = arith.constant 0 : index
    %1 = vector.load %arg2[%c0_1, %c0_2] : memref<1x128xf32, #tpu.memory_space<vmem>>, vector<1x128xf32>
    %c8_i32 = arith.constant 8 : i32
    %2 = arith.muli %arg0, %c8_i32 : i32
    %3 = arith.sitofp %2 : i32 to f32
    %4 = vector.broadcast %3 : f32 to vector<1x128xf32>
    %5 = arith.mulf %4, %0 : vector<1x128xf32>
    %6 = arith.addf %1, %5 : vector<1x128xf32>
    %7 = math.sin %6 : vector<1x128xf32>
    %8 = math.cos %6 : vector<1x128xf32>
    %c0_3 = arith.constant 0 : index
    %c0_4 = arith.constant 0 : index
    %9 = vector.load %arg4[%c0_3, %c0_4] : memref<8x128xf32, #tpu.memory_space<vmem>>, vector<8x128xf32>
    %10 = vector.broadcast %7 : vector<1x128xf32> to vector<8x128xf32>
    %11 = arith.mulf %10, %9 : vector<8x128xf32>
    %c0_5 = arith.constant 0 : index
    %c0_6 = arith.constant 0 : index
    %12 = vector.load %arg3[%c0_5, %c0_6] : memref<8x128xf32, #tpu.memory_space<vmem>>, vector<8x128xf32>
    %13 = vector.broadcast %8 : vector<1x128xf32> to vector<8x128xf32>
    %14 = arith.mulf %13, %12 : vector<8x128xf32>
    %15 = arith.addf %11, %14 : vector<8x128xf32>
    %c0_7 = arith.constant 0 : index
    %c0_8 = arith.constant 0 : index
    %16 = vector.load %arg5[%c0_7, %c0_8] : memref<8x128xf32, #tpu.memory_space<vmem>>, vector<8x128xf32>
    tpu.vector_store %arg5[%c0_7, %c0_8], %15 {strides = array<i32>} : memref<8x128xf32, #tpu.memory_space<vmem>>, vector<8x128xf32>,
    return
  }
  func.func @transform_0(%arg0: i32) -> (i32, i32) {
    %c0_i32 = arith.constant 0 : i32
    %c0_i32_0 = arith.constant 0 : i32
    %c0_i32_1 = arith.constant 0 : i32
    return %c0_i32, %c0_i32_0 : i32, i32
  }
  func.func @transform_1(%arg0: i32) -> (i32, i32) {
    %c0_i32 = arith.constant 0 : i32
    %c0_i32_0 = arith.constant 0 : i32
    %c0_i32_1 = arith.constant 0 : i32
    return %c0_i32, %c0_i32_0 : i32, i32
  }
  func.func @transform_2(%arg0: i32) -> (i32, i32) {
    %c0_i32 = arith.constant 0 : i32
    %c0_i32_0 = arith.constant 0 : i32
    %c0_i32_1 = arith.constant 0 : i32
    return %c0_i32, %c0_i32_0 : i32, i32
  }
  func.func @transform_3(%arg0: i32) -> (i32, i32) {
    %c0_i32 = arith.constant 0 : i32
    %c0_i32_0 = arith.constant 0 : i32
    %c0_i32_1 = arith.constant 0 : i32
    return %c0_i32, %c0_i32_0 : i32, i32
  }
  func.func @transform_4(%arg0: i32) -> (i32, i32) {
    %c0_i32 = arith.constant 0 : i32
    %c0_i32_0 = arith.constant 0 : i32
    return %arg0, %c0_i32 : i32, i32
  }
}

</mosaic_0001>

<bundles_post_ra>
// kernel: tpu_custom_call.1
= control target key start
LH: loop header
LB: loop body
LE: loop exit
PB: predicated region body
PF: predicated region fallthrough
CT: control target
= control target key end

     0   :  { %9 = vsyncpa [#allocation3], 0  ;;  %s664_s0 = inlined_call_operand.hbm [shape: f32[1,128], index: 0, kind: input, shape index: {}]   ;;  %s665_s1 = inlined_call_operand.hbm [shape: f32[1,128], index: 1, kind: input, shape index: {}]   ;;  %s666_s2 = inlined_call_operand.hbm [shape: f32[8,128], index: 2, kind: input, shape index: {}]   ;;  %s667_s3 = inlined_call_operand.hbm [shape: f32[8,128], index: 3, kind: input, shape index: {}]   ;;  %s668_s4 = inlined_call_operand.hbm [shape: f32[8,128], index: 4, kind: output, shape index: {}]  }
   0x1   :  { %10 = vsyncpa [#allocation6], 0 }
   0x2   :  { %11 = vsyncpa [#allocation9], 0  ;;  %s29_s17 = sshll.u32 %s665_s1, 4  ;;  %s30_s17 = int_to_ptr.hbm [resolvable:$true] %s29_s17 }
   0x3   :  { %12 = vsyncpa [#allocation4], 0  ;;  %s566_s18 = smov [#allocation5]   ;;  %s18_s22 = sshll.u32 %s664_s0, 4  ;;  %s19_s22 = int_to_ptr.hbm [resolvable:$true] %s18_s22 }
   0x4   :  { %s31_s19 = sshll.u32 %s566_s18, 4  ;;  %s567_s23 = smov [#allocation2]   ;;  %s32_s19 = int_to_ptr.vmem [resolvable:$true] %s31_s19 }
   0x5   :  { %34 = dma.hbm_to_vmem [thread:$0]  %s30_s17, 16, %s32_s19, [#allocation6]  }
   0x6   :  { %s20_s24 = sshll.u32 %s567_s23, 4  ;;  %s40_s27 = sshll.u32 %s666_s2, 4  ;;  %s21_s24 = int_to_ptr.vmem [resolvable:$true] %s20_s24  ;;  %s41_s27 = int_to_ptr.hbm [resolvable:$true] %s40_s27 }
   0x7   :  { %23 = dma.hbm_to_vmem [thread:$0]  %s19_s22, 16, %s21_s24, [#allocation3]  }
   0x8   :  { %s51_s29 = sshll.u32 %s667_s3, 4  ;;  %s568_s30 = smov [#allocation7]   ;;  %s52_s29 = int_to_ptr.hbm [resolvable:$true] %s51_s29 }
   0x9   :  { %s42_s5 = sshll.u32 %s568_s30, 4  ;;  %s569_s0 = smov [#allocation8]   ;;  %s43_s5 = int_to_ptr.vmem [resolvable:$true] %s42_s5 }
   0xa   :  { %45 = dma.hbm_to_vmem [thread:$0]  %s41_s27, 128, %s43_s5, [#allocation6]  }
   0xb   :  { %s53_s6 = sshll.u32 %s569_s0, 4  ;;  %s54_s6 = int_to_ptr.vmem [resolvable:$true] %s53_s6 }
   0xc   :  { %56 = dma.hbm_to_vmem [thread:$0]  %s52_s29, 128, %s54_s6, [#allocation9]  }
   0xd   :  { %558 = dma.done.wait [#allocation3], 16  }
   0xe   :  { %559 = vsyncadd [#allocation3], 4294967280 }
   0xf   :  { %560 = dma.done.wait [#allocation6], 144  }
  0x10   :  { %561 = vsyncadd [#allocation6], 4294967152 }
  0x11   :  { %562 = dma.done.wait [#allocation9], 128  }
  0x12   :  { %563 = vsyncadd [#allocation9], 4294967168  ;;  %v73_v0 = vld [vmem:[#allocation2] sm:$0x1]  ;;  %v74_v1 = vld [vmem:[#allocation5] sm:$0x1] }
  0x13   :  { %v78_v2 = vmul.f32 0.0, %v73_v0  ;;  %v570_v15 = vmov 683565275   ;;  %v571_v17 = vmov 2475754826   ;;  %s577_s2 = smov [#allocation10]  }
  0x14   :  { %v572_v19 = vmov 2131351028   ;;  %v573_v21 = vmov 2102212464   ;;  %v574_v23 = vmov 920167782  }
  0x15   :  { %v615_v3 = vadd.f32 %v78_v2, %v74_v1  ;;  %v575_v29 = vmov 1326507024   ;;  %s406_s3 = sshll.u32 %s577_s2, 4  ;;  %s408_s9 = sshll.u32 %s668_s4, 4  ;;  %s407_s3 = int_to_ptr.vmem [resolvable:$true] %s406_s3  ;;  %s409_s9 = int_to_ptr.hbm [resolvable:$true] %s408_s9 }
  0x17   :  { %v83_v4 = vand.u32 2139095040, %v615_v3  ;;  %v80_v6 = vand.u32 2147483647, %v615_v3  ;;  %vm82_vm12 = vcmp.lt.s32.totalorder %v615_v3, 0 }
  0x19   :  { %v84_v5 = vshrl.u32 %v83_v4, 23  ;;  %v87_v9 = vand.u32 8388607, %v80_v6  ;;  %v576_v4 = vmov 0   ;;  %vm81_vm13 = vcmp.le.f32.partialorder %v80_v6, 0.7853982 }
  0x1b   :  { %v420_v7 = vadd.s32 4294967169, %v84_v5  ;;  %v88_v12 = vor.u32 8388608, %v87_v9 }
  0x1d   :  { %v90_v8 = vadd.s32 1, %v420_v7  ;;  %v624_v31 = vshll.u32 %v88_v12, 8 }
  0x1f   :  { %vm91_vm0 = vcmp.gt.s32.totalorder %v90_v8, 0  ;;  %v129_v43 = vand.u32 65535, %v624_v31  ;;  %v130_v44 = vshrl.u32 %v624_v31, 16 }
  0x20   :  { %v92_v10 = vsel %vm91_vm0, %v90_v8, 0 }
  0x21   :  { %v94_v11 = vand.u32 31, %v92_v10  ;;  %v621_v13 = vshrl.u32 %v92_v10, 5 }
  0x23   :  { %v95_v14 = vsub.s32 32, %v94_v11  ;;  %v97_v16 = vshll.u32 %v570_v15, %v94_v11  ;;  %v100_v18 = vshll.u32 %v571_v17, %v94_v11  ;;  %v103_v20 = vshll.u32 %v572_v19, %v94_v11 }
  0x24   :  { %v106_v22 = vshll.u32 %v573_v21, %v94_v11  ;;  %v109_v24 = vshll.u32 %v574_v23, %v94_v11  ;;  %vm112_vm1 = vcmp.lt.s32.totalorder %v621_v13, 1  ;;  %vm115_vm2 = vcmp.lt.s32.totalorder %v621_v13, 4 }
  0x25   :  { %v98_v25 = vshrl.u32 %v571_v17, %v95_v14  ;;  %v101_v26 = vshrl.u32 %v572_v19, %v95_v14  ;;  %v104_v27 = vshrl.u32 %v573_v21, %v95_v14  ;;  %v107_v28 = vshrl.u32 %v574_v23, %v95_v14 }
  0x26   :  { %v110_v30 = vshrl.u32 %v575_v29, %v95_v14  ;;  %vm114_vm3 = vcmp.lt.s32.totalorder %v621_v13, 3  ;;  %vm113_vm4 = vcmp.lt.s32.totalorder %v621_v13, 2  ;;  %v96_v51 = vshrl.u32 %v570_v15, %v95_v14 }
  0x27   :  { %v99_v32 = vor.u32 %v98_v25, %v97_v16  ;;  %v102_v33 = vor.u32 %v101_v26, %v100_v18  ;;  %v105_v34 = vor.u32 %v104_v27, %v103_v20  ;;  %v108_v35 = vor.u32 %v107_v28, %v106_v22 }
  0x28   :  { %v111_v36 = vor.u32 %v110_v30, %v109_v24 }
  0x29   :  { %v120_v37 = vsel %vm112_vm1, %v99_v32, %v102_v33  ;;  %v124_v38 = vsel %vm112_vm1, %v102_v33, %v105_v34  ;;  %v121_v39 = vsel %vm115_vm2, %v108_v35, 920167782  ;;  %v116_v0 = vsel %vm112_vm1, %v96_v51, %v99_v32 }
  0x2a   :  { %v125_v40 = vsel %vm115_vm2, %v111_v36, 1326507024  ;;  %v122_v41 = vsel %vm114_vm3, %v105_v34, %v121_v39  ;;  %v117_v2 = vsel %vm115_vm2, %v105_v34, 2102212464 }
  0x2b   :  { %v126_v42 = vsel %vm114_vm3, %v108_v35, %v125_v40  ;;  %v123_v45 = vsel %vm113_vm4, %v120_v37, %v122_v41  ;;  %v118_v15 = vsel %vm114_vm3, %v102_v33, %v117_v2 }
  0x2c   :  { %v127_v46 = vsel %vm113_vm4, %v124_v38, %v126_v42  ;;  %v153_v49 = vand.u32 65535, %v123_v45  ;;  %v154_v50 = vshrl.u32 %v123_v45, 16  ;;  %v119_v23 = vsel %vm113_vm4, %v116_v0, %v118_v15 }
  0x2d   :  { %v131_v47 = vand.u32 65535, %v127_v46  ;;  %v132_v48 = vshrl.u32 %v127_v46, 16  ;;  %v173_v27 = vmul.u32 %v624_v31, %v119_v23  ;;  %vm223_vm4 = vweird.f32 %v615_v3  ;;  %v394_v23 = vld [vmem:[#allocation7] sm:$0xff] }
  0x2e   :  { %v155_v55 = vmul.u32 %v153_v49, %v129_v43  ;;  %v156_v56 = vmul.u32 %v154_v50, %v129_v43  ;;  %v157_v57 = vmul.u32 %v153_v49, %v130_v44  ;;  %v158_v61 = vmul.u32 %v154_v50, %v130_v44 }
  0x2f   :  { %v133_v52 = vmul.u32 %v131_v47, %v129_v43  ;;  %v134_v53 = vmul.u32 %v132_v48, %v129_v43  ;;  %v135_v54 = vmul.u32 %v131_v47, %v130_v44  ;;  %v136_v58 = vmul.u32 %v132_v48, %v130_v44 }
  0x30   :  { %v159_v62 = vshll.u32 %v156_v56, 16  ;;  %v161_v63 = vshll.u32 %v157_v57, 16  ;;  %v160_v12 = vshrl.u32 %v156_v56, 16  ;;  %v162_v19 = vshrl.u32 %v157_v57, 16 }
  0x31   :  { %v137_v59 = vshll.u32 %v134_v53, 16  ;;  %v139_v60 = vshll.u32 %v135_v54, 16  ;;  %v138_v8 = vshrl.u32 %v134_v53, 16  ;;  %v140_v16 = vshrl.u32 %v135_v54, 16 }
  0x32   :  { %vm163_vm6 = vc.u32 %v155_v55, %v159_v62  ;;  %v165_v7 = vadd.s32 %v159_v62, %v155_v55 }
  0x33   :  { %vm141_vm5 = vc.u32 %v133_v52, %v137_v59  ;;  %v143_v1 = vadd.s32 %v137_v59, %v133_v52  ;;  %v164_v10 = vsel %vm163_vm6, 1, %v576_v4 }
  0x34   :  { %v142_v5 = vsel %vm141_vm5, 1, %v576_v4  ;;  %v166_v14 = vadd.s32 %v164_v10, %v158_v61  ;;  %vm167_vm8 = vc.u32 %v165_v7, %v161_v63  ;;  %v169_v22 = vadd.s32 %v165_v7, %v161_v63 }
  0x35   :  { %v144_v9 = vadd.s32 %v142_v5, %v136_v58  ;;  %vm145_vm7 = vc.u32 %v143_v1, %v139_v60  ;;  %v168_v18 = vsel %vm167_vm8, 1, %v576_v4 }
  0x36   :  { %v146_v11 = vsel %vm145_vm7, 1, %v576_v4  ;;  %v170_v20 = vadd.s32 %v168_v18, %v166_v14 }
  0x37   :  { %v148_v17 = vadd.s32 %v146_v11, %v144_v9 }
  0x38   :  { %v171_v24 = vadd.s32 %v170_v20, %v160_v12 }
  0x39   :  { %v149_v21 = vadd.s32 %v148_v17, %v138_v8 }
  0x3a   :  { %v172_v26 = vadd.s32 %v171_v24, %v162_v19 }
  0x3b   :  { %v150_v25 = vadd.s32 %v149_v21, %v140_v16 }
  0x3c   :  { %v176_v28 = vadd.s32 1, %v172_v26 }
  0x3d   :  { %vm175_vm9 = vc.u32 %v150_v25, %v169_v22  ;;  %v174_v13 = vadd.s32 %v169_v22, %v150_v25  ;;  %v389_v22 = vld [vmem:[#allocation8] sm:$0xff] }
  0x3e   :  { %v177_v29 = vsel %vm175_vm9, %v176_v28, %v172_v26 }
  0x3f   :  { %v178_v30 = vadd.s32 %v177_v29, %v173_v27 }
  0x41   :  { %v179_v32 = vadd.s32 536870912, %v178_v30 }
  0x43   :  { %v180_v33 = vshrl.u32 %v179_v32, 30 }
  0x45   :  { %v181_v34 = vshll.u32 %v180_v33, 30  ;;  %v204_v51 = vsub.s32 4, %v180_v33 }
  0x47   :  { %v182_v35 = vsub.s32 %v178_v30, %v181_v34  ;;  %v205_v54 = vsel %vm82_vm12, %v204_v51, %v180_v33 }
  0x48   :  { %v207_v57 = vsel %vm81_vm13, 0, %v205_v54 }
  0x49   :  { %vm183_vm10 = vcmp.lt.s32.totalorder %v182_v35, 0  ;;  %v184_v36 = vsub.s32 0, %v182_v35  ;;  %v224_v62 = vadd.s32 3, %v207_v57  ;;  %v379_v5 = vand.u32 3, %v207_v57 }
  0x4b   :  { %v185_v37 = vsel %vm183_vm10, %v184_v36, %v182_v35  ;;  %v225_v4 = vand.u32 3, %v224_v62  ;;  %vm384_vm15 = vcmp.eq.s32.totalorder %v379_v5, 2  ;;  %vm381_vm2 = vcmp.eq.s32.totalorder %v379_v5, 0 }
  0x4c   :  { %v186_v38 = vclz %v185_v37  ;;  %vm380_vm3 = vcmp.lt.s32.totalorder %v379_v5, 2 }
  0x4d   :  { %vm230_vm14 = vcmp.eq.s32.totalorder %v225_v4, 2  ;;  %vm226_vm0 = vcmp.lt.s32.totalorder %v225_v4, 2  ;;  %vm227_vm1 = vcmp.eq.s32.totalorder %v225_v4, 0 }
  0x4e   :  { %v421_v39 = vadd.s32 4294967294, %v186_v38 }
  0x50   :  { %vm422_vm11 = vcmp.lt.s32.totalorder %v421_v39, 0 }
  0x51   :  { %v189_v40 = vsel %vm422_vm11, 0, %v421_v39 }
  0x52   :  { %v190_v41 = vsub.s32 32, %v189_v40  ;;  %v191_v42 = vshll.u32 %v182_v35, %v189_v40  ;;  %v194_v43 = vsub.s32 4294967266, %v189_v40 }
  0x54   :  { %v192_v31 = vshrl.u32 %v174_v13, %v190_v41  ;;  %v195_v44 = vadd.s32 127, %v194_v43 }
  0x56   :  { %v193_v45 = vor.u32 %v192_v31, %v191_v42  ;;  %v196_v46 = vshll.u32 %v195_v44, 23 }
  0x58   :  { %v197_v47 = vor.u32 4788187, %v196_v46  ;;  %v200_v48 = vcvt.s32.f32 %v193_v45 }
  0x5a   :  { %v198_v49 = vand.u32 2147483647, %v197_v47 }
  0x5c   :  { %v201_v50 = vmul.f32 %v200_v48, %v198_v49 }
  0x5e   :  { %v202_v52 = vxor.u32 2147483648, %v201_v50 }
  0x60   :  { %v203_v53 = vsel %vm82_vm12, %v202_v52, %v201_v50 }
  0x61   :  { %v206_v55 = vsel %vm81_vm13, %v615_v3, %v203_v53 }
  0x62   :  { %v208_v56 = vmul.f32 %v206_v55, %v206_v55 }
  0x64   :  { %v209_v58 = vmul.f32 -0.001358992, %v208_v56  ;;  %v216_v59 = vmul.f32 -0.00019511016, %v208_v56 }
  0x66   :  { %v210_v60 = vadd.f32 0.041655596, %v209_v58  ;;  %v217_v61 = vadd.f32 0.008332121, %v216_v59 }
  0x68   :  { %v211_v63 = vmul.f32 %v210_v60, %v208_v56  ;;  %v218_v0 = vmul.f32 %v217_v61, %v208_v56 }
  0x6a   :  { %v212_v1 = vadd.f32 -0.4999988, %v211_v63  ;;  %v219_v2 = vadd.f32 -0.16666654, %v218_v0 }
  0x6c   :  { %v213_v7 = vmul.f32 %v212_v1, %v208_v56  ;;  %v220_v6 = vmul.f32 %v219_v2, %v208_v56 }
  0x6e   :  { %v214_v8 = vadd.f32 1.0, %v213_v7  ;;  %v221_v9 = vadd.f32 1.0, %v220_v6 }
  0x70   :  { %v222_v10 = vmul.f32 %v221_v9, %v206_v55  ;;  %v231_v11 = vxor.u32 2147483648, %v214_v8 }
  0x72   :  { %v228_v12 = vxor.u32 2147483648, %v222_v10  ;;  %v232_v14 = vsel %vm230_vm14, %v231_v11, %v222_v10  ;;  %v386_v15 = vsel %vm384_vm15, %v231_v11, %v222_v10 }
  0x74   :  { %v229_v16 = vsel %vm227_vm1, %v214_v8, %v228_v12  ;;  %v383_v17 = vsel %vm381_vm2, %v214_v8, %v228_v12 }
  0x75   :  { %v233_v18 = vsel %vm226_vm0, %v229_v16, %v232_v14  ;;  %v387_v19 = vsel %vm380_vm3, %v383_v17, %v386_v15 }
  0x76   :  { %v234_v20 = vsel %vm223_vm4, nan, %v233_v18  ;;  %v388_v21 = vsel %vm223_vm4, nan, %v387_v19 }
  0x77   :  { %v391_v24 = vperm.slane %v234_v20, 0  ;;  %v396_v25 = vperm.slane %v388_v21, 0 }
  0x79   :  { %v393_v26 = vmul.f32 %v391_v24, %v389_v22  ;;  %v398_v27 = vmul.f32 %v396_v25, %v394_v23 }
  0x7b   :  { %v399_v28 = vadd.f32 %v398_v27, %v393_v26 }
  0x7d   :  { %400 = vst [vmem:[#allocation10] sm:$0xff] %v399_v28 }
  0x7e   :  { %411 = dma.vmem_to_hbm [thread:$0]  %s407_s3, 128, %s409_s9, [#allocation4]  }
  0x7f   :  { %564 = dma.done.wait [#allocation4], 128  }
  0x80   :  { %565 = vsyncadd [#allocation4], 4294967168 }
  0x81   :  { %416 = vsyncpa [#allocation3], 1 }
  0x82   :  { %417 = vsyncpa [#allocation6], 1 }
  0x83   :  { %418 = vsyncpa [#allocation9], 1 }
  0x84   :  { %419 = vsyncpa [#allocation4], 1 }

</bundles_post_ra>
